<compile_context>
chip_gen: v7x
topology: tpu7x:2x2x1
jax: 0.10.0
libtpu: 0.0.40
codegen_flags: <defaults>
</compile_context>

<pallas_src>
import functools

import jax
import jax.numpy as jnp
from jax import lax
from jax.experimental import pallas as pl
from jax.experimental.pallas import tpu as pltpu


def _interp_matrix(out_size: int, in_size: int) -> jnp.ndarray:
    """(out_size, in_size) bilinear interpolation matrix, align_corners=False,
    PyTorch half-pixel convention (negative source coords clamped to 0)."""
    scale = in_size / out_size
    dst = jnp.arange(out_size, dtype=jnp.float32)
    src = jnp.maximum((dst + 0.5) * scale - 0.5, 0.0)
    i0 = jnp.clip(jnp.floor(src).astype(jnp.int32), 0, in_size - 1)
    i1 = jnp.clip(i0 + 1, 0, in_size - 1)
    w1 = src - i0.astype(jnp.float32)
    w0 = 1.0 - w1
    return (w0[:, None] * jax.nn.one_hot(i0, in_size, dtype=jnp.float32)
            + w1[:, None] * jax.nn.one_hot(i1, in_size, dtype=jnp.float32))


def _vmem_info():
    """(vmem_capacity_bytes, known) with a conservative 64 MiB fallback."""
    cap, known = 64 * 1024 * 1024, False
    try:
        cap = int(pltpu.get_tpu_info().vmem_capacity_bytes)
        known = True
    except Exception:
        pass
    return cap, known


def _choose_tiling(b, h_in, w_in, h_out, w_out, x_item, out_item, op_item):
    """Trace-time choice of plane block Bc, output tiles (TH, TW) and matmul
    association order, sized against the actual per-generation VMEM capacity."""
    cap, known = _vmem_info()
    budget = int(cap * 0.70)           # headroom for compiler scratch / pipeline
    # v7x is the only generation with 64 MiB VMEM per TensorCore and it has two
    # TensorCores sharing the grid -> keep >= 2 parallel grid steps there.
    multi_core = known and cap <= 64 * 1024 * 1024

    def step_bytes(bc, th, tw):
        x_blk = bc * h_in * w_in * x_item * 2            # double-buffered input block
        o_blk = bc * th * tw * out_item * 2              # double-buffered output block
        wh_blk = th * h_in * op_item * 2                 # constant blocks, still 2x
        ww_blk = w_in * tw * op_item * 2
        x_cast = bc * h_in * w_in * op_item              # in-kernel operand copy
        wh_bcast = bc * th * h_in * op_item              # broadcast Wh for batched dot
        t_mid = bc * max(h_in * tw, th * w_in) * (4 + op_item)   # f32 stage-1 + cast
        o_f32 = bc * th * tw * 4                         # f32 result before store cast
        return x_blk + o_blk + wh_blk + ww_blk + x_cast + wh_bcast + t_mid + o_f32

    # Bounded plane block (keeps the batched-matmul unroll / compile time sane);
    # the VMEM budget below may shrink it further.
    bc = min(b, 64)
    th, tw = h_out, w_out

    while bc > 1 and step_bytes(bc, th, tw) > budget:
        bc = max(1, bc // 2)

    # Single plane still over budget: tile W_out in 128-lane multiples, then
    # H_out in 8-sublane multiples (keeps the (8,128) blocking rules satisfied).
    if step_bytes(bc, th, tw) > budget and w_out > 128:
        tw = max(128, (w_out // 2 // 128) * 128)
        while tw > 128 and step_bytes(bc, th, tw) > budget:
            tw = max(128, (tw // 2 // 128) * 128)
    if step_bytes(bc, th, tw) > budget and h_out > 8:
        th = max(8, (h_out // 2 // 8) * 8)
        while th > 8 and step_bytes(bc, th, tw) > budget:
            th = max(8, (th // 2 // 8) * 8)
    # TODO(synk): no K (w_in / h_in) tiling with accumulation yet; gigantic
    # source planes could still exceed VMEM.

    nb, nh, nw = pl.cdiv(b, bc), pl.cdiv(h_out, th), pl.cdiv(w_out, tw)
    if multi_core and b >= 2 and nb * nh * nw < 2:
        bc = (b + 1) // 2            # give both v7x TensorCores a grid step
        nb = pl.cdiv(b, bc)

    # Association order: avoid recomputing stage-1 work when an output axis is
    # tiled; otherwise pick the smaller intermediate.
    if nh > 1 and nw == 1:
        ww_first = False
    elif nw > 1 and nh == 1:
        ww_first = True
    else:
        ww_first = (h_in * w_out) <= (h_out * w_in)

    vmem_limit = int(cap * 0.90)
    return bc, th, tw, ww_first, vmem_limit


def _bilinear_kernel(x_ref, wh_ref, ww_ref, o_ref, *, ww_first: bool, op_dtype):
    # x_ref : (Bc, H_in, W_in)  block of (n*c) planes, native dtype
    # wh_ref: (TH, H_in)        row-interpolation matrix tile, operand dtype
    # ww_ref: (W_in, TW)        column-interpolation matrix tile, operand dtype
    # o_ref : (Bc, TH, TW)      native dtype
    bc, h_in, w_in = x_ref.shape
    th = wh_ref.shape[0]
    tw = ww_ref.shape[1]

    x = x_ref[...].astype(op_dtype)                                  # (Bc, H_in, W_in)
    wh = wh_ref[...]
    ww = ww_ref[...]
    # Shared Wh, broadcast over the plane block for the batched contraction
    # (leading-dim batch slices are layout-aligned -> no per-plane relayouts).
    wh_b = jnp.broadcast_to(wh[None, :, :], (bc, th, h_in))
    batch_dims = (((2,), (1,)), ((0,), (0,)))                        # contract H_in

    if ww_first:
        # Stage 1 (W-interp): one collapsed MXU matmul, M = Bc*H_in.
        tmp = jnp.dot(x.reshape(bc * h_in, w_in), ww,
                      preferred_element_type=jnp.float32)            # (Bc*H_in, TW)
        tmp = tmp.reshape(bc, h_in, tw).astype(op_dtype)
        # Stage 2 (H-interp): single batched dot_general, one dense store.
        out = lax.dot_general(wh_b, tmp, dimension_numbers=batch_dims,
                              preferred_element_type=jnp.float32)    # (Bc, TH, TW)
    else:
        # Stage 1 (H-interp): batched over planes with the shared Wh tile.
        t = lax.dot_general(wh_b, x, dimension_numbers=batch_dims,
                            preferred_element_type=jnp.float32)      # (Bc, TH, W_in)
        # Stage 2 (W-interp): collapsed MXU matmul, M = Bc*TH.
        out = jnp.dot(t.reshape(bc * th, w_in).astype(op_dtype), ww,
                      preferred_element_type=jnp.float32)            # (Bc*TH, TW)
        out = out.reshape(bc, th, tw)

    o_ref[...] = out.astype(o_ref.dtype)


def interpolate_bilinear(image: jnp.ndarray, height: int, width: int) -> jnp.ndarray:
    """Equivalent of F.interpolate(image, size=(height, width), mode='bilinear',
    align_corners=False) for an NCHW input (native dtype in, native dtype out)."""
    n, c, h_in, w_in = image.shape
    h_out, w_out = int(height), int(width)
    b = n * c

    # bf16 inputs keep bf16 MXU operands (f32 accumulation); everything else
    # uses f32 operands for bit-closeness to the PyTorch reference.
    op_dtype = jnp.bfloat16 if image.dtype == jnp.bfloat16 else jnp.float32
    op_item = jnp.dtype(op_dtype).itemsize

    wh = _interp_matrix(h_out, h_in).astype(op_dtype)          # (H_out, H_in)
    ww = _interp_matrix(w_out, w_in).T.astype(op_dtype)        # (W_in, W_out)

    itemsize = jnp.dtype(image.dtype).itemsize
    bc, th, tw, ww_first, vmem_limit = _choose_tiling(
        b, h_in, w_in, h_out, w_out, itemsize, itemsize, op_item)
    nb = pl.cdiv(b, bc)
    nh = pl.cdiv(h_out, th)
    nw = pl.cdiv(w_out, tw)

    x = image.reshape(b, h_in, w_in)                           # native dtype, no upcast

    kernel = functools.partial(_bilinear_kernel, ww_first=ww_first, op_dtype=op_dtype)
    out = pl.pallas_call(
        kernel,
        out_shape=jax.ShapeDtypeStruct((b, h_out, w_out), image.dtype),
        grid=(nb, nh, nw),
        in_specs=[
            pl.BlockSpec((bc, h_in, w_in), lambda i, h, j: (i, 0, 0)),
            pl.BlockSpec((th, h_in), lambda i, h, j: (h, 0)),
            pl.BlockSpec((w_in, tw), lambda i, h, j: (0, j)),
        ],
        out_specs=pl.BlockSpec((bc, th, tw), lambda i, h, j: (i, h, j)),
        compiler_params=pltpu.CompilerParams(
            dimension_semantics=("parallel", "parallel", "parallel"),
            vmem_limit_bytes=vmem_limit),
    )(x, wh, ww)

    return out.reshape(n, c, h_out, w_out)


class Interpolate:
    """JAX/Pallas port of the PyTorch Interpolate module (bilinear path)."""

    def __init__(self, scale: float = 0.0, width: int = -1, height: int = -1,
                 mode: str = 'bilinear', align_corners: bool = False,
                 recompute_scale_factor: bool = False,
                 preserve_aspect_ratio: bool = False):
        assert mode == 'bilinear' and not align_corners, \
            "only mode='bilinear', align_corners=False implemented"
        # TODO(synk): 'nearest'/'linear'/'area'/'bicubic'/'trilinear' modes and
        # recompute_scale_factor have no Pallas path here.
        self.preserve_aspect_ratio = preserve_aspect_ratio
        self.scale = scale
        self.resolution = [height, width]

    def _calc_size(self, input_shape, target_shape):
        if self.preserve_aspect_ratio:
            h, w = target_shape
            if h > w:
                return (h, int(input_shape[1] * (h / input_shape[0])))
            else:
                return (int(input_shape[0] * (w / input_shape[1])), w)
        return target_shape

    def __call__(self, image, target=None):
        in_h, in_w = image.shape[2], image.shape[3]
        if target is None and not self.preserve_aspect_ratio:
            if self.scale > 0.0 and self.resolution[0] < 0 and self.resolution[1] < 0:
                out_h, out_w = int(in_h * self.scale), int(in_w * self.scale)
            else:
                out_h, out_w = self.resolution
        else:
            tgt = target.shape[2:] if target is not None else self.resolution
            out_h, out_w = self._calc_size((in_h, in_w), tgt)
        return interpolate_bilinear(image, int(out_h), int(out_w))


if __name__ == "__main__":
    key = jax.random.PRNGKey(0)
    # NCHW input, small shapes: batch=2, channels=4, spatial 16x16 -> 32x32
    x = jax.random.normal(key, (2, 4, 16, 16), dtype=jnp.float32)

    module = Interpolate(width=32, height=32, mode='bilinear', align_corners=False)
    y = jax.block_until_ready(module(x))

    assert y.shape == (2, 4, 32, 32), y.shape
    assert y.dtype == x.dtype, y.dtype

    # Sanity check vs jax.image.resize (same half-pixel convention; valid for
    # upsampling only — jax antialiases on downsampling, PyTorch/this kernel do not).
    ref = jax.image.resize(x, (2, 4, 32, 32), method="bilinear")
    assert jnp.max(jnp.abs(y - ref)) < 1e-4

    print("KERNEL_OK")
</pallas_src>

<mosaic_0001>
module attributes {stable_mosaic.version = 11 : i64} {
  func.func @_bilinear_kernel(%arg0: i32, %arg1: i32, %arg2: i32, %arg3: memref<8x16x16xf32, #tpu.memory_space<vmem>>, %arg4: memref<32x16xf32, #tpu.memory_space<vmem>>, %arg5: memref<16x32xf32, #tpu.memory_space<vmem>>, %arg6: memref<8x32x32xf32, #tpu.memory_space<vmem>>) attributes {dimension_semantics = [#tpu.dimension_semantics<parallel>, #tpu.dimension_semantics<parallel>, #tpu.dimension_semantics<parallel>], iteration_bounds = array<i64: 1, 1, 1>, scalar_prefetch = 0 : i64, scratch_operands = 0 : i64, tpu.core_type = #tpu.core_type<tc>, window_params = [{transform_indices = @transform_0, window_bounds = array<i64: 8, 16, 16>}, {transform_indices = @transform_1, window_bounds = array<i64: 32, 16>}, {transform_indices = @transform_2, window_bounds = array<i64: 16, 32>}, {transform_indices = @transform_3, window_bounds = array<i64: 8, 32, 32>}]} {
    %c0 = arith.constant 0 : index
    %c0_0 = arith.constant 0 : index
    %c0_1 = arith.constant 0 : index
    %0 = vector.load %arg3[%c0, %c0_0, %c0_1] : memref<8x16x16xf32, #tpu.memory_space<vmem>>, vector<8x16x16xf32>
    %c0_2 = arith.constant 0 : index
    %c0_3 = arith.constant 0 : index
    %1 = vector.load %arg4[%c0_2, %c0_3] : memref<32x16xf32, #tpu.memory_space<vmem>>, vector<32x16xf32>
    %c0_4 = arith.constant 0 : index
    %c0_5 = arith.constant 0 : index
    %2 = vector.load %arg5[%c0_4, %c0_5] : memref<16x32xf32, #tpu.memory_space<vmem>>, vector<16x32xf32>
    %3 = vector.shape_cast %1 : vector<32x16xf32> to vector<1x32x16xf32>
    %4 = vector.shape_cast %3 : vector<1x32x16xf32> to vector<1x32x16xf32>
    %5 = vector.broadcast %4 : vector<1x32x16xf32> to vector<8x32x16xf32>
    %6 = vector.shape_cast %0 : vector<8x16x16xf32> to vector<128x16xf32>
    %cst = arith.constant dense<0.000000e+00> : vector<128x32xf32>
    %7 = tpu.matmul %6, %2, %cst {dimension_numbers = #tpu.dot_dimension_numbers<[1], [0], [0], [1], [0, 0, 1, 1], [], []>} : vector<128x16xf32>, vector<16x32xf32>, vector<128x32xf32> -> vector<128x32xf32>
    %8 = vector.shape_cast %7 : vector<128x32xf32> to vector<8x16x32xf32>
    %cst_6 = arith.constant dense<0.000000e+00> : vector<8x32x32xf32>
    %9 = tpu.matmul %5, %8, %cst_6 {dimension_numbers = #tpu.dot_dimension_numbers<[2], [1], [1], [2], [0, 0, 0, 1, 1, 2], [0], [0]>} : vector<8x32x16xf32>, vector<8x16x32xf32>, vector<8x32x32xf32> -> vector<8x32x32xf32>
    %c0_7 = arith.constant 0 : index
    %c0_8 = arith.constant 0 : index
    %c0_9 = arith.constant 0 : index
    %10 = vector.load %arg6[%c0_7, %c0_8, %c0_9] : memref<8x32x32xf32, #tpu.memory_space<vmem>>, vector<8x32x32xf32>
    tpu.vector_store %arg6[%c0_7, %c0_8, %c0_9], %9 {strides = array<i32>} : memref<8x32x32xf32, #tpu.memory_space<vmem>>, vector<8x32x32xf32>,
    return
  }
  func.func @transform_0(%arg0: i32, %arg1: i32, %arg2: i32) -> (i32, i32, i32) {
    %c0_i32 = arith.constant 0 : i32
    %c0_i32_0 = arith.constant 0 : i32
    %c0_i32_1 = arith.constant 0 : i32
    return %arg0, %c0_i32, %c0_i32_0 : i32, i32, i32
  }
  func.func @transform_1(%arg0: i32, %arg1: i32, %arg2: i32) -> (i32, i32) {
    %c0_i32 = arith.constant 0 : i32
    %c0_i32_0 = arith.constant 0 : i32
    return %arg1, %c0_i32 : i32, i32
  }
  func.func @transform_2(%arg0: i32, %arg1: i32, %arg2: i32) -> (i32, i32) {
    %c0_i32 = arith.constant 0 : i32
    %c0_i32_0 = arith.constant 0 : i32
    return %c0_i32, %arg2 : i32, i32
  }
  func.func @transform_3(%arg0: i32, %arg1: i32, %arg2: i32) -> (i32, i32, i32) {
    %c0_i32 = arith.constant 0 : i32
    return %arg0, %arg1, %arg2 : i32, i32, i32
  }
}

</mosaic_0001>

<bundles_post_ra>
// kernel: tpu_custom_call.1
= control target key start
LH: loop header
LB: loop body
LE: loop exit
PB: predicated region body
PF: predicated region fallthrough
CT: control target
= control target key end

     0   :  { %8 = vsyncpa [#allocation3], 0  ;;  %s1469_s0 = inlined_call_operand.hbm [shape: f32[8,16,16], index: 0, kind: input, shape index: {}]   ;;  %s1470_s1 = inlined_call_operand.vmem [shape: f32[32,16], index: 1, kind: input, shape index: {}]   ;;  %s1471_s2 = inlined_call_operand.vmem [shape: f32[16,32], index: 2, kind: input, shape index: {}]   ;;  %s1472_s3 = inlined_call_operand.hbm [shape: f32[8,32,32], index: 3, kind: output, shape index: {}]  }
   0x1   :  { %9 = vsyncpa [#allocation4], 0  ;;  %s1297_s12 = smov [#allocation2]   ;;  %s1249_s16 = scalar_lea.hbm %s1469_s0, 2048 }
   0x2   :  { %s15_s13 = sshll.u32 %s1297_s12, 4  ;;  %p1250_p0 = scmp.ne.s32.totalorder %s1469_s0, %s1249_s16  ;;  %s16_s13 = int_to_ptr.vmem [resolvable:$true] %s15_s13 }
   0x3   :  { %p1253_p1 = scmp.lt.u32.totalorder %s1249_s16, %s1469_s0 }
   0x5   :  { %p1255_p2 = pnand %p1253_p1, %p1250_p0 }
   0x7   :  { %1258 = shalt.err (!%p1255_p2)
}
   0x8   :  { %s1259_s21 = scalar_lea.vmem %s16_s13, 2048  ;;  %p1264_p4 = scmp.lt.s32.totalorder %s16_s13, %s16_s13 }
   0x9   :  { %p1260_p3 = scmp.ne.s32.totalorder %s16_s13, %s1259_s21  ;;  %p1265_p5 = scmp.lt.s32.totalorder %s1259_s21, %s1259_s21 }
   0xb   :  { %p1266_p6 = por %p1265_p5, %p1264_p4 }
   0xd   :  { %p1267_p7 = pnand %p1266_p6, %p1260_p3 }
   0xf   :  { %1270 = shalt.err (!%p1267_p7)
}
  0x10   :  { %s1298_s22 = smov 128   ;;  %s1299_s23 = smov 8  }
  0x11   :  { %21 = dma.hbm_to_vmem [thread:$0]  %s1469_s0, 2048, %s16_s13, [#allocation3], %s1298_s22, %s1298_s22, %s1299_s23  }
  0x12   :  { %1293 = dma.done.wait [#allocation3], 2048  }
  0x13   :  { %1294 = vsyncadd [#allocation3], 4294965248  ;;  %vm51_vm0 = vcmask 130048   ;;  %v49_v0 = vld [vmem:[%s1471_s2] sm:$0xff]  ;;  %v50_v1 = vld [vmem:[%s1471_s2 + $0x8] sm:$0xff]  ;;  %vm937_vm1 = vcmask 261120  }
  0x14   :  { %v29_v2 = vld [vmem:[#allocation2] sm:$0xff]  ;;  %v1209_v3 = vpack.c.bf16 %v50_v1, %v49_v0  ;;  %v30_v4 = vld [vmem:[#allocation2 + $0x8] sm:$0xff]  ;;  %v31_v5 = vld [vmem:[#allocation2 + $0x10] sm:$0xff] }
  0x15   :  { %1105 = vmatprep.mubr.msk.f32.mxu0 %vm51_vm0, %v29_v2  ;;  %v32_v6 = vld [vmem:[#allocation2 + $0x18] sm:$0xff]  ;;  %v33_v7 = vld [vmem:[#allocation2 + $0x20] sm:$0xff]  ;;  %v34_v8 = vld [vmem:[#allocation2 + $0x28] sm:$0xff] }
  0x16   :  { %1210 = vmatprep.subr.bf16.mxu0 %v1209_v3  ;;  %v35_v9 = vld [vmem:[#allocation2 + $0x30] sm:$0xff]  ;;  %v36_v10 = vld [vmem:[#allocation2 + $0x38] sm:$0xff]  ;;  %v37_v11 = vld [vmem:[#allocation2 + $0x40] sm:$0xff] }
  0x17   :  { %1212 = vmatpush3.bf16.msra.mxu0 %v1209_v3  ;;  %v38_v12 = vld [vmem:[#allocation2 + $0x48] sm:$0xff]  ;;  %v39_v13 = vld [vmem:[#allocation2 + $0x50] sm:$0xff]  ;;  %v40_v14 = vld [vmem:[#allocation2 + $0x58] sm:$0xff] }
  0x18   :  { %v41_v15 = vld [vmem:[#allocation2 + $0x60] sm:$0xff]  ;;  %v42_v16 = vld [vmem:[#allocation2 + $0x68] sm:$0xff]  ;;  %v43_v17 = vld [vmem:[#allocation2 + $0x70] sm:$0xff] }
  0x19   :  { %v44_v18 = vld [vmem:[#allocation2 + $0x78] sm:$0xff]  ;;  %v1361_v19 = vld [vmem:[%s1470_s1] sm:$0xff]  ;;  %v1370_v25 = vld [vmem:[%s1470_s1 + $0x8] sm:$0xff] }
  0x1a   :  { %1106 = vmatmul.mubr.msk.f32.vlgmr.msra.gmra.mrb[0].mxu0 %vm51_vm0, %v30_v4  ;;  %1133 = vmatprep.mubr.msk.f32.mxu1 %vm51_vm0, %v1361_v19  ;;  %v47_v27 = vld [vmem:[%s1470_s1 + $0x10] sm:$0xff]  ;;  %v48_v30 = vld [vmem:[%s1470_s1 + $0x18] sm:$0xff]  ;;  %s1300_s1 = smov [#allocation5]  }
  0x1b   :  { %1108 = vmatprep.mubr.msk.f32.mxu0 %vm51_vm0, %v31_v5  ;;  %s975_s9 = sshll.u32 %s1300_s1, 4  ;;  %s976_s9 = int_to_ptr.vmem [resolvable:$true] %s975_s9 }
  0x1c   :  { %s1271_s10 = scalar_lea.vmem %s976_s9, 4096  ;;  %p1276_p9 = scmp.lt.s32.totalorder %s976_s9, %s976_s9 }
  0x1d   :  { %p1272_p8 = scmp.ne.s32.totalorder %s976_s9, %s1271_s10  ;;  %p1277_p10 = scmp.lt.s32.totalorder %s1271_s10, %s1271_s10 }
  0x1e   :  { %1109 = vmatmul.mubr.msk.f32.gmra.mrb[2].mxu0 %vm51_vm0, %v32_v6 }
  0x1f   :  { %1111 = vmatprep.mubr.msk.f32.mxu0 %vm51_vm0, %v33_v7  ;;  %p1278_p11 = por %p1277_p10, %p1276_p9 }
  0x21   :  { %p1279_p12 = pnand %p1278_p11, %p1272_p8 }
  0x22   :  { %1112 = vmatmul.mubr.msk.f32.gmra.mrb[4].mxu0 %vm51_vm0, %v34_v8 }
  0x23   :  { %1114 = vmatprep.mubr.msk.f32.mxu0 %vm51_vm0, %v35_v9 }
  0x26   :  { %1115 = vmatmul.mubr.msk.f32.gmra.mrb[6].mxu0 %vm51_vm0, %v36_v10 }
  0x27   :  { %1117 = vmatprep.mubr.msk.f32.mxu0 %vm51_vm0, %v37_v11 }
  0x2a   :  { %1118 = vmatmul.mubr.msk.f32.gmra.mrb[8].mxu0 %vm51_vm0, %v38_v12 }
  0x2b   :  { %1120 = vmatprep.mubr.msk.f32.mxu0 %vm51_vm0, %v39_v13 }
  0x2e   :  { %1121 = vmatmul.mubr.msk.f32.gmra.mrb[10].mxu0 %vm51_vm0, %v40_v14 }
  0x2f   :  { %1123 = vmatprep.mubr.msk.f32.mxu0 %vm51_vm0, %v41_v15 }
  0x32   :  { %1124 = vmatmul.mubr.msk.f32.gmra.mrb[12].mxu0 %vm51_vm0, %v42_v16 }
  0x33   :  { %1126 = vmatprep.mubr.msk.f32.mxu0 %vm51_vm0, %v43_v17 }
  0x36   :  { %1127 = vmatmul.mubr.msk.f32.gmra.mrb[14].mxu0 %vm51_vm0, %v44_v18 }
  0x37   :  { %1173 = vmatprep.mubr.msk.f32.mxu0 %vm51_vm0, %v1361_v19 }
  0xed   :  { %v1107_v20 = vpop.f32.mrb[0].mxu0 }
  0xee   :  { %v166_v21 = vpop.f32.mrb[1].mxu0 }
  0xef   :  { %v1213_v22 = vpack.c.bf16 %v1107_v20, %v166_v21 }
  0xf1   :  { %v1110_v23 = vpop.f32.mrb[2].mxu0  ;;  %1214 = vmatprep.subr.bf16.mxu1 %v1213_v22 }
  0xf2   :  { %v176_v24 = vpop.f32.mrb[3].mxu0  ;;  %1216 = vmatpush3.bf16.msra.mxu1 %v1213_v22 }
  0xf3   :  { %v1217_v26 = vpack.c.bf16 %v1110_v23, %v176_v24 }
  0xf5   :  { %v1113_v28 = vpop.f32.mrb[4].mxu0  ;;  %1134 = vmatmul.mubr.msk.f32.vlgmr.msra.gmra.mrb[0].mxu1 %vm51_vm0, %v1370_v25  ;;  %1218 = vmatprep.subr.bf16.mxu1 %v1217_v26 }
  0xf6   :  { %v186_v29 = vpop.f32.mrb[5].mxu0  ;;  %1220 = vmatpush3.bf16.msra.mxu1 %v1217_v26  ;;  %1136 = vmatprep.mubr.msk.f32.mxu1 %vm51_vm0, %v47_v27 }
  0xf7   :  { %v1221_v31 = vpack.c.bf16 %v1113_v28, %v186_v29 }
  0xf9   :  { %v1116_v32 = vpop.f32.mrb[6].mxu0  ;;  %1137 = vmatmul.mubr.msk.f32.gmra.mrb[2].mxu1 %vm51_vm0, %v48_v30  ;;  %1222 = vmatprep.subr.bf16.mxu1 %v1221_v31 }
  0xfa   :  { %v196_v33 = vpop.f32.mrb[7].mxu0  ;;  %1143 = vmatprep.mubr.msk.f32.mxu1 %vm51_vm0, %v1361_v19 }
  0xfb   :  { %v1225_v34 = vpack.c.bf16 %v1116_v32, %v196_v33 }
  0xfd   :  { %v1119_v35 = vpop.f32.mrb[8].mxu0  ;;  %1144 = vmatmul.mubr.msk.f32.vlgmr.msra.gmra.mrb[4].mxu1 %vm51_vm0, %v1370_v25 }
  0xfe   :  { %1224 = vmatpush3.bf16.msra.mxu1 %v1221_v31  ;;  %v206_v36 = vpop.f32.mrb[9].mxu0  ;;  %1146 = vmatprep.mubr.msk.f32.mxu1 %vm51_vm0, %v47_v27 }
  0xff   :  { %v1229_v37 = vpack.c.bf16 %v1119_v35, %v206_v36  ;;  %1226 = vmatprep.subr.bf16.mxu1 %v1225_v34 }
 0x101   :  { %1147 = vmatmul.mubr.msk.f32.gmra.mrb[6].mxu1 %vm51_vm0, %v48_v30  ;;  %1230 = vmatprep.subr.bf16.mxu0 %v1229_v37  ;;  %v1122_v38 = vpop.f32.mrb[10].mxu0 }
 0x102   :  { %1232 = vmatpush3.bf16.msra.mxu0 %v1229_v37  ;;  %1153 = vmatprep.mubr.msk.f32.mxu1 %vm51_vm0, %v1361_v19  ;;  %v216_v39 = vpop.f32.mrb[11].mxu0 }
 0x103   :  { %v1233_v40 = vpack.c.bf16 %v1122_v38, %v216_v39 }
 0x105   :  { %1154 = vmatmul.mubr.msk.f32.vlgmr.msra.gmra.mrb[8].mxu1 %vm51_vm0, %v1370_v25  ;;  %v1125_v41 = vpop.f32.mrb[12].mxu0  ;;  %1174 = vmatmul.mubr.msk.f32.vlgmr.msra.gmra.mrb[16].mxu0 %vm51_vm0, %v1370_v25 }
 0x106   :  { %1228 = vmatpush3.bf16.msra.mxu1 %v1225_v34  ;;  %1156 = vmatprep.mubr.msk.f32.mxu1 %vm51_vm0, %v47_v27  ;;  %v226_v42 = vpop.f32.mrb[13].mxu0 }
 0x107   :  { %1234 = vmatprep.subr.bf16.mxu1 %v1233_v40  ;;  %v1237_v43 = vpack.c.bf16 %v1125_v41, %v226_v42  ;;  %1176 = vmatprep.mubr.msk.f32.mxu0 %vm51_vm0, %v47_v27 }
 0x109   :  { %1157 = vmatmul.mubr.msk.f32.gmra.mrb[10].mxu1 %vm51_vm0, %v48_v30  ;;  %v1128_v44 = vpop.f32.mrb[14].mxu0  ;;  %1238 = vmatprep.subr.bf16.mxu0 %v1237_v43 }
 0x10a   :  { %1163 = vmatprep.mubr.msk.f32.mxu1 %vm51_vm0, %v1361_v19  ;;  %v236_v45 = vpop.f32.mrb[15].mxu0  ;;  %1240 = vmatpush3.bf16.msra.mxu0 %v1237_v43 }
 0x10b   :  { %v1241_v46 = vpack.c.bf16 %v1128_v44, %v236_v45  ;;  %1177 = vmatmul.mubr.msk.f32.gmra.mrb[18].mxu0 %vm51_vm0, %v48_v30 }
 0x10c   :  { %1193 = vmatprep.mubr.msk.f32.mxu0 %vm51_vm0, %v1361_v19 }
 0x10d   :  { %1164 = vmatmul.mubr.msk.f32.vlgmr.msra.gmra.mrb[12].mxu1 %vm51_vm0, %v1370_v25 }
 0x10e   :  { %1236 = vmatpush3.bf16.msra.mxu1 %v1233_v40  ;;  %1166 = vmatprep.mubr.msk.f32.mxu1 %vm51_vm0, %v47_v27 }
 0x10f   :  { %1242 = vmatprep.subr.bf16.mxu1 %v1241_v46  ;;  %1194 = vmatmul.mubr.msk.f32.vlgmr.msra.gmra.mrb[20].mxu0 %vm51_vm0, %v1370_v25 }
 0x110   :  { %1196 = vmatprep.mubr.msk.f32.mxu0 %vm51_vm0, %v47_v27 }
 0x111   :  { %1167 = vmatmul.mubr.msk.f32.gmra.mrb[14].mxu1 %vm51_vm0, %v48_v30 }
 0x112   :  { %1183 = vmatprep.mubr.msk.f32.mxu1 %vm51_vm0, %v1361_v19 }
 0x113   :  { %1197 = vmatmul.mubr.msk.f32.gmra.mrb[22].mxu0 %vm51_vm0, %v48_v30 }
 0x115   :  { %1184 = vmatmul.mubr.msk.f32.vlgmr.msra.gmra.mrb[16].mxu1 %vm51_vm0, %v1370_v25 }
 0x116   :  { %1244 = vmatpush3.bf16.msra.mxu1 %v1241_v46  ;;  %1186 = vmatprep.mubr.msk.f32.mxu1 %vm51_vm0, %v47_v27 }
 0x119   :  { %1187 = vmatmul.mubr.msk.f32.gmra.mrb[18].mxu1 %vm51_vm0, %v48_v30 }
 0x11a   :  { %1203 = vmatprep.mubr.msk.f32.mxu1 %vm51_vm0, %v1361_v19 }
 0x11d   :  { %1204 = vmatmul.mubr.msk.f32.vlgmr.msra.gmra.mrb[20].mxu1 %vm51_vm0, %v1370_v25 }
 0x11e   :  { %1206 = vmatprep.mubr.msk.f32.mxu1 %vm51_vm0, %v47_v27 }
 0x121   :  { %1207 = vmatmul.mubr.msk.f32.gmra.mrb[22].mxu1 %vm51_vm0, %v48_v30 }
 0x1c8   :  { %v1135_v47 = vpop.f32.mrb[0].mxu1 }
 0x1c9   :  { %939 = vst.msk [vmem:[#allocation5 + $0x8] sm:$0xff] %vm937_vm1, %v1135_v47  ;;  %v323_v48 = vpop.f32.mrb[1].mxu1 }
 0x1ca   :  { %938 = vst.msk [vmem:[#allocation5] sm:$0xff] %vm937_vm1, %v323_v48 }
 0x1cc   :  { %v1138_v49 = vpop.f32.mrb[2].mxu1 }
 0x1cd   :  { %941 = vst.msk [vmem:[#allocation5 + $0x18] sm:$0xff] %vm937_vm1, %v1138_v49  ;;  %v333_v50 = vpop.f32.mrb[3].mxu1 }
 0x1ce   :  { %940 = vst.msk [vmem:[#allocation5 + $0x10] sm:$0xff] %vm937_vm1, %v333_v50 }
 0x1d0   :  { %v1145_v51 = vpop.f32.mrb[4].mxu1 }
 0x1d1   :  { %943 = vst.msk [vmem:[#allocation5 + $0x28] sm:$0xff] %vm937_vm1, %v1145_v51  ;;  %v408_v52 = vpop.f32.mrb[5].mxu1 }
 0x1d2   :  { %942 = vst.msk [vmem:[#allocation5 + $0x20] sm:$0xff] %vm937_vm1, %v408_v52 }
 0x1d4   :  { %v1148_v53 = vpop.f32.mrb[6].mxu1 }
 0x1d5   :  { %945 = vst.msk [vmem:[#allocation5 + $0x38] sm:$0xff] %vm937_vm1, %v1148_v53  ;;  %v418_v54 = vpop.f32.mrb[7].mxu1 }
 0x1d6   :  { %944 = vst.msk [vmem:[#allocation5 + $0x30] sm:$0xff] %vm937_vm1, %v418_v54 }
 0x1d8   :  { %v1155_v55 = vpop.f32.mrb[8].mxu1  ;;  %v1175_v56 = vpop.f32.mrb[16].mxu0 }
 0x1d9   :  { %947 = vst.msk [vmem:[#allocation5 + $0x48] sm:$0xff] %vm937_vm1, %v1155_v55  ;;  %v493_v57 = vpop.f32.mrb[9].mxu1  ;;  %955 = vst.msk [vmem:[#allocation5 + $0x88] sm:$0xff] %vm937_vm1, %v1175_v56  ;;  %v663_v58 = vpop.f32.mrb[17].mxu0 }
 0x1da   :  { %946 = vst.msk [vmem:[#allocation5 + $0x40] sm:$0xff] %vm937_vm1, %v493_v57  ;;  %954 = vst.msk [vmem:[#allocation5 + $0x80] sm:$0xff] %vm937_vm1, %v663_v58 }
 0x1dc   :  { %v1158_v59 = vpop.f32.mrb[10].mxu1 }
 0x1dd   :  { %949 = vst.msk [vmem:[#allocation5 + $0x58] sm:$0xff] %vm937_vm1, %v1158_v59  ;;  %v503_v60 = vpop.f32.mrb[11].mxu1 }
 0x1de   :  { %948 = vst.msk [vmem:[#allocation5 + $0x50] sm:$0xff] %vm937_vm1, %v503_v60  ;;  %v1178_v61 = vpop.f32.mrb[18].mxu0 }
 0x1df   :  { %957 = vst.msk [vmem:[#allocation5 + $0x98] sm:$0xff] %vm937_vm1, %v1178_v61  ;;  %v673_v62 = vpop.f32.mrb[19].mxu0 }
 0x1e0   :  { %v1165_v63 = vpop.f32.mrb[12].mxu1  ;;  %956 = vst.msk [vmem:[#allocation5 + $0x90] sm:$0xff] %vm937_vm1, %v673_v62 }
 0x1e1   :  { %951 = vst.msk [vmem:[#allocation5 + $0x68] sm:$0xff] %vm937_vm1, %v1165_v63  ;;  %v578_v0 = vpop.f32.mrb[13].mxu1 }
 0x1e2   :  { %950 = vst.msk [vmem:[#allocation5 + $0x60] sm:$0xff] %vm937_vm1, %v578_v0  ;;  %v1195_v1 = vpop.f32.mrb[20].mxu0 }
 0x1e3   :  { %963 = vst.msk [vmem:[#allocation5 + $0xc8] sm:$0xff] %vm937_vm1, %v1195_v1  ;;  %v833_v2 = vpop.f32.mrb[21].mxu0 }
 0x1e4   :  { %v1168_v3 = vpop.f32.mrb[14].mxu1  ;;  %962 = vst.msk [vmem:[#allocation5 + $0xc0] sm:$0xff] %vm937_vm1, %v833_v2 }
 0x1e5   :  { %953 = vst.msk [vmem:[#allocation5 + $0x78] sm:$0xff] %vm937_vm1, %v1168_v3  ;;  %v588_v4 = vpop.f32.mrb[15].mxu1 }
 0x1e6   :  { %952 = vst.msk [vmem:[#allocation5 + $0x70] sm:$0xff] %vm937_vm1, %v588_v4  ;;  %v1198_v5 = vpop.f32.mrb[22].mxu0 }
 0x1e7   :  { %965 = vst.msk [vmem:[#allocation5 + $0xd8] sm:$0xff] %vm937_vm1, %v1198_v5  ;;  %v843_v6 = vpop.f32.mrb[23].mxu0 }
 0x1e8   :  { %v1185_v7 = vpop.f32.mrb[16].mxu1  ;;  %964 = vst.msk [vmem:[#allocation5 + $0xd0] sm:$0xff] %vm937_vm1, %v843_v6 }
 0x1e9   :  { %959 = vst.msk [vmem:[#allocation5 + $0xa8] sm:$0xff] %vm937_vm1, %v1185_v7  ;;  %v748_v8 = vpop.f32.mrb[17].mxu1 }
 0x1ea   :  { %958 = vst.msk [vmem:[#allocation5 + $0xa0] sm:$0xff] %vm937_vm1, %v748_v8 }
 0x1ec   :  { %v1188_v9 = vpop.f32.mrb[18].mxu1 }
 0x1ed   :  { %961 = vst.msk [vmem:[#allocation5 + $0xb8] sm:$0xff] %vm937_vm1, %v1188_v9  ;;  %v758_v10 = vpop.f32.mrb[19].mxu1 }
 0x1ee   :  { %960 = vst.msk [vmem:[#allocation5 + $0xb0] sm:$0xff] %vm937_vm1, %v758_v10 }
 0x1f0   :  { %v1205_v11 = vpop.f32.mrb[20].mxu1 }
 0x1f1   :  { %967 = vst.msk [vmem:[#allocation5 + $0xe8] sm:$0xff] %vm937_vm1, %v1205_v11  ;;  %v918_v12 = vpop.f32.mrb[21].mxu1 }
 0x1f2   :  { %966 = vst.msk [vmem:[#allocation5 + $0xe0] sm:$0xff] %vm937_vm1, %v918_v12 }
 0x1f4   :  { %v1208_v13 = vpop.f32.mrb[22].mxu1 }
 0x1f5   :  { %969 = vst.msk [vmem:[#allocation5 + $0xf8] sm:$0xff] %vm937_vm1, %v1208_v13  ;;  %v928_v14 = vpop.f32.mrb[23].mxu1 }
 0x1f6   :  { %968 = vst.msk [vmem:[#allocation5 + $0xf0] sm:$0xff] %vm937_vm1, %v928_v14 }
 0x1f7   :  { %1282 = shalt.err (!%p1279_p12)
}
 0x1f8   :  { %s1283_s13 = scalar_lea.hbm %s1472_s3, 4096 }
 0x1f9   :  { %p1284_p13 = scmp.ne.s32.totalorder %s1472_s3, %s1283_s13  ;;  %p1287_p0 = scmp.lt.u32.totalorder %s1283_s13, %s1472_s3 }
 0x1fb   :  { %p1289_p1 = pnand %p1287_p0, %p1284_p13 }
 0x1fd   :  { %1292 = shalt.err (!%p1289_p1)
}
 0x1fe   :  { %981 = dma.vmem_to_hbm [thread:$0]  %s976_s9, 4096, %s1472_s3, [#allocation4], %s1298_s22, %s1298_s22, %s1299_s23  }
 0x1ff   :  { %1295 = dma.done.wait [#allocation4], 4096  }
 0x200   :  { %1296 = vsyncadd [#allocation4], 4294963200 }
 0x201   :  { %985 = vsyncpa [#allocation3], 1 }
 0x202   :  { %986 = vsyncpa [#allocation4], 1 }

</bundles_post_ra>
